<compile_context>
chip_gen: v6e
topology: v6e:2x2x1
jax: 0.10.0
libtpu: 0.0.40
codegen_flags: <defaults>
</compile_context>

<pallas_src>
import jax
import jax.numpy as jnp
from jax.experimental import pallas as pl
from jax.experimental.pallas import tpu as pltpu


def _round_up(a, m):
    return (a + m - 1) // m * m


def _pick_tile(padded, candidates):
    """Largest candidate tile dividing `padded` (padded is a 128-multiple)."""
    for t in candidates:
        if padded % t == 0:
            return t
    return padded


def _sublane_multiple(dtype):
    # f32 -> 8, bf16 -> 16, int8/fp8 -> 32
    return max(8, 32 // jnp.dtype(dtype).itemsize)


def geglu_kernel(x_ref, wv_ref, wg_ref, bv_ref, bg_ref, o_ref,
                 accv_ref, accg_ref):
    k = pl.program_id(2)

    @pl.when(k == 0)
    def _():
        # Fold bias into the accumulator init (drops two epilogue VALU adds).
        accv_ref[...] = jnp.broadcast_to(
            bv_ref[...].astype(jnp.float32), accv_ref.shape)
        accg_ref[...] = jnp.broadcast_to(
            bg_ref[...].astype(jnp.float32), accg_ref.shape)

    x = x_ref[...]
    accv_ref[...] += jnp.dot(x, wv_ref[...], preferred_element_type=jnp.float32)
    accg_ref[...] += jnp.dot(x, wg_ref[...], preferred_element_type=jnp.float32)

    @pl.when(k == pl.num_programs(2) - 1)
    def _():
        v = accv_ref[...]
        g = accg_ref[...]
        # exact GELU (erf form) == torch.nn.functional.gelu default
        inv_sqrt2 = jnp.float32(0.7071067811865476)
        gelu_g = 0.5 * g * (1.0 + jax.lax.erf(g * inv_sqrt2))
        o_ref[...] = (v * gelu_g).astype(o_ref.dtype)


def prepare_geglu_params(w, b, compute_dtype=jnp.bfloat16):
    """Pad (if ragged) and cast the GEGLU projection params once.

    w: (dim_in, 2*dim_out)  (transposed nn.Linear weight), b: (2*dim_out,).
    Returns (w_use, b_use, dim_in, dim_out, k_pad, half_pad). Call once and
    reuse across forwards to avoid per-call weight rebuilds / casts.
    """
    dim_in, two_do = w.shape
    dim_out = two_do // 2
    k_pad = _round_up(dim_in, 128)
    half_pad = _round_up(dim_out, 128)

    if half_pad != dim_out or k_pad != dim_in:
        wv = jnp.pad(w[:, :dim_out],
                     ((0, k_pad - dim_in), (0, half_pad - dim_out)))
        wg = jnp.pad(w[:, dim_out:],
                     ((0, k_pad - dim_in), (0, half_pad - dim_out)))
        w_use = jnp.concatenate([wv, wg], axis=1)
        b_use = jnp.concatenate(
            [jnp.pad(b[:dim_out], (0, half_pad - dim_out)),
             jnp.pad(b[dim_out:], (0, half_pad - dim_out))])
    else:
        # Aligned fast path: halves are selected purely by the index_map.
        w_use = w
        b_use = b

    w_use = w_use.astype(compute_dtype)
    # Bias stays in its original (f32) precision; it is tiny and added in f32.
    b_use = b_use.reshape(1, 2 * half_pad)
    return w_use, b_use, dim_in, dim_out, k_pad, half_pad


def geglu(x, w, b, compute_dtype=jnp.bfloat16):
    """GEGLU forward.

    x: (..., dim_in); w: (dim_in, 2*dim_out); b: (2*dim_out,).
    compute_dtype: MXU operand dtype (bf16 default; f32 accumulation always).
    Returns (..., dim_out) in x.dtype.
    """
    w_use, b_use, dim_in, dim_out, k_pad, half_pad = prepare_geglu_params(
        w, b, compute_dtype)

    orig_shape = x.shape
    xf = x.reshape(-1, dim_in)
    N = xf.shape[0]
    out_dtype = x.dtype

    # ---- tile selection -----------------------------------------------------
    # Row tile must respect both the compute-dtype and output-dtype sublane
    # multiples (bf16 -> 16, f32 -> 8).
    tm_mult = max(_sublane_multiple(compute_dtype), _sublane_multiple(out_dtype))
    if N >= 4096:
        tm = 1024
    elif N >= 512:
        tm = 512
    else:
        tm = _round_up(N, tm_mult)
    n_pad = _round_up(N, tm)

    tk = _pick_tile(k_pad, (512, 256, 128))
    tn = _pick_tile(half_pad, (512, 256, 128))

    nm = n_pad // tm
    nn = half_pad // tn
    nk = k_pad // tk

    # ---- pad / cast activations ---------------------------------------------
    if xf.dtype != compute_dtype:
        xf = xf.astype(compute_dtype)
    if n_pad != N or k_pad != dim_in:
        xf = jnp.pad(xf, ((0, n_pad - N), (0, k_pad - dim_in)))

    # ---- cost estimate (advisory) -------------------------------------------
    itemsize = lambda a: jnp.dtype(a.dtype).itemsize
    flops = 2 * n_pad * k_pad * (2 * half_pad)
    transcendentals = n_pad * half_pad
    bytes_accessed = (xf.size * itemsize(xf)
                      + w_use.size * itemsize(w_use)
                      + b_use.size * itemsize(b_use)
                      + n_pad * half_pad * jnp.dtype(out_dtype).itemsize)

    out = pl.pallas_call(
        geglu_kernel,
        out_shape=jax.ShapeDtypeStruct((n_pad, half_pad), out_dtype),
        grid_spec=pltpu.PrefetchScalarGridSpec(
            num_scalar_prefetch=0,
            grid=(nm, nn, nk),
            in_specs=[
                # x row/K tile
                pl.BlockSpec((tm, tk), lambda i, j, k: (i, k)),
                # value half of W: column block j
                pl.BlockSpec((tk, tn), lambda i, j, k: (k, j)),
                # gate half of W: column block j + nn (second half of array)
                pl.BlockSpec((tk, tn), lambda i, j, k: (k, j + nn)),
                # bias value / gate halves
                pl.BlockSpec((1, tn), lambda i, j, k: (0, j)),
                pl.BlockSpec((1, tn), lambda i, j, k: (0, j + nn)),
            ],
            out_specs=pl.BlockSpec((tm, tn), lambda i, j, k: (i, j)),
            scratch_shapes=[
                pltpu.VMEM((tm, tn), jnp.float32),   # value accumulator
                pltpu.VMEM((tm, tn), jnp.float32),   # gate accumulator
            ],
        ),
        compiler_params=pltpu.CompilerParams(
            dimension_semantics=("parallel", "parallel", "arbitrary"),
            vmem_limit_bytes=48 * 1024 * 1024),
        cost_estimate=pl.CostEstimate(
            flops=int(flops),
            transcendentals=int(transcendentals),
            bytes_accessed=int(bytes_accessed)),
    )(xf, w_use, w_use, b_use, b_use)

    out = out[:N, :dim_out]
    return out.reshape(*orig_shape[:-1], dim_out)


def geglu_reference(x, w, b, compute_dtype=jnp.float32):
    """Pure-JAX reference; optionally mimics bf16 MXU operands."""
    dim_out = w.shape[1] // 2
    h = jnp.dot(x.astype(compute_dtype), w.astype(compute_dtype),
                preferred_element_type=jnp.float32) + b.astype(jnp.float32)
    v, g = h[..., :dim_out], h[..., dim_out:]
    inv_sqrt2 = jnp.float32(0.7071067811865476)
    out = v * (0.5 * g * (1.0 + jax.lax.erf(g * inv_sqrt2)))
    return out.astype(x.dtype)


if __name__ == "__main__":
    batch, seq, dim_in, dim_out = 2, 8, 32, 32

    key = jax.random.PRNGKey(0)
    kx, kw, kb = jax.random.split(key, 3)

    # Deterministic parameter init (nn.Linear-like uniform bound 1/sqrt(dim_in))
    bound = 1.0 / (dim_in ** 0.5)
    x = jax.random.normal(kx, (batch, seq, dim_in), dtype=jnp.float32)
    w = jax.random.uniform(kw, (dim_in, dim_out * 2), minval=-bound, maxval=bound,
                           dtype=jnp.float32)
    b = jax.random.uniform(kb, (dim_out * 2,), minval=-bound, maxval=bound,
                           dtype=jnp.float32)

    # Default (bf16 MXU operands, f32 accumulation) path.
    out_bf16 = jax.block_until_ready(geglu(x, w, b))
    assert out_bf16.shape == (batch, seq, dim_out)
    ref_bf16 = geglu_reference(x, w, b, compute_dtype=jnp.bfloat16)
    ref_f32 = geglu_reference(x, w, b, compute_dtype=jnp.float32)
    assert jnp.allclose(out_bf16, ref_bf16, atol=5e-3, rtol=5e-3), \
        "bf16-path mismatch vs bf16 reference"
    assert jnp.allclose(out_bf16, ref_f32, atol=5e-2, rtol=5e-2), \
        "bf16-path mismatch vs f32 reference"

    # Full-f32 path (exact vs torch semantics).
    out_f32 = jax.block_until_ready(geglu(x, w, b, compute_dtype=jnp.float32))
    assert jnp.allclose(out_f32, ref_f32, atol=1e-5, rtol=1e-5), \
        "f32-path mismatch vs f32 reference"

    print("KERNEL_OK")
</pallas_src>

<mosaic_0001>
module attributes {stable_mosaic.version = 11 : i64} {
  func.func @geglu_kernel(%arg0: i32, %arg1: i32, %arg2: i32, %arg3: memref<16x128xbf16, #tpu.memory_space<vmem>>, %arg4: memref<128x128xbf16, #tpu.memory_space<vmem>>, %arg5: memref<128x128xbf16, #tpu.memory_space<vmem>>, %arg6: memref<1x128xf32, #tpu.memory_space<vmem>>, %arg7: memref<1x128xf32, #tpu.memory_space<vmem>>, %arg8: memref<16x128xf32, #tpu.memory_space<vmem>>, %arg9: memref<16x128xf32, #tpu.memory_space<vmem>>, %arg10: memref<16x128xf32, #tpu.memory_space<vmem>>) attributes {dimension_semantics = [#tpu.dimension_semantics<parallel>, #tpu.dimension_semantics<parallel>, #tpu.dimension_semantics<arbitrary>], iteration_bounds = array<i64: 1, 1, 1>, scalar_prefetch = 0 : i64, scratch_operands = 2 : i64, tpu.core_type = #tpu.core_type<tc>, window_params = [{transform_indices = @transform_0, window_bounds = array<i64: 16, 128>}, {transform_indices = @transform_1, window_bounds = array<i64: 128, 128>}, {transform_indices = @transform_2, window_bounds = array<i64: 128, 128>}, {transform_indices = @transform_3, window_bounds = array<i64: 1, 128>}, {transform_indices = @transform_4, window_bounds = array<i64: 1, 128>}, {transform_indices = @transform_5, window_bounds = array<i64: 16, 128>}]} {
    %c0_i32 = arith.constant 0 : i32
    %0 = arith.cmpi eq, %arg2, %c0_i32 : i32
    %1 = arith.extui %0 : i1 to i32
    %c0_i32_0 = arith.constant 0 : i32
    %2 = arith.cmpi ne, %1, %c0_i32_0 : i32
    scf.if %2 {
      %c0_17 = arith.constant 0 : index
      %c0_18 = arith.constant 0 : index
      %17 = vector.load %arg6[%c0_17, %c0_18] : memref<1x128xf32, #tpu.memory_space<vmem>>, vector<1x128xf32>
      %18 = vector.shape_cast %17 : vector<1x128xf32> to vector<1x128xf32>
      %19 = vector.broadcast %18 : vector<1x128xf32> to vector<16x128xf32>
      %c0_19 = arith.constant 0 : index
      %c0_20 = arith.constant 0 : index
      %20 = vector.load %arg9[%c0_19, %c0_20] : memref<16x128xf32, #tpu.memory_space<vmem>>, vector<16x128xf32>
      tpu.vector_store %arg9[%c0_19, %c0_20], %19 {strides = array<i32>} : memref<16x128xf32, #tpu.memory_space<vmem>>, vector<16x128xf32>,
      %c0_21 = arith.constant 0 : index
      %c0_22 = arith.constant 0 : index
      %21 = vector.load %arg7[%c0_21, %c0_22] : memref<1x128xf32, #tpu.memory_space<vmem>>, vector<1x128xf32>
      %22 = vector.shape_cast %21 : vector<1x128xf32> to vector<1x128xf32>
      %23 = vector.broadcast %22 : vector<1x128xf32> to vector<16x128xf32>
      %c0_23 = arith.constant 0 : index
      %c0_24 = arith.constant 0 : index
      %24 = vector.load %arg10[%c0_23, %c0_24] : memref<16x128xf32, #tpu.memory_space<vmem>>, vector<16x128xf32>
      tpu.vector_store %arg10[%c0_23, %c0_24], %23 {strides = array<i32>} : memref<16x128xf32, #tpu.memory_space<vmem>>, vector<16x128xf32>,
    } else {
    }
    %c0 = arith.constant 0 : index
    %c0_1 = arith.constant 0 : index
    %3 = vector.load %arg3[%c0, %c0_1] : memref<16x128xbf16, #tpu.memory_space<vmem>>, vector<16x128xbf16>
    %c0_2 = arith.constant 0 : index
    %c0_3 = arith.constant 0 : index
    %4 = vector.load %arg9[%c0_2, %c0_3] : memref<16x128xf32, #tpu.memory_space<vmem>>, vector<16x128xf32>
    %c0_4 = arith.constant 0 : index
    %c0_5 = arith.constant 0 : index
    %5 = vector.load %arg4[%c0_4, %c0_5] : memref<128x128xbf16, #tpu.memory_space<vmem>>, vector<128x128xbf16>
    %cst = arith.constant dense<0.000000e+00> : vector<16x128xf32>
    %6 = tpu.matmul %3, %5, %cst {dimension_numbers = #tpu.dot_dimension_numbers<[1], [0], [0], [1], [0, 0, 1, 1], [], []>} : vector<16x128xbf16>, vector<128x128xbf16>, vector<16x128xf32> -> vector<16x128xf32>
    %7 = arith.addf %4, %6 : vector<16x128xf32>
    %c0_6 = arith.constant 0 : index
    %c0_7 = arith.constant 0 : index
    %8 = vector.load %arg9[%c0_6, %c0_7] : memref<16x128xf32, #tpu.memory_space<vmem>>, vector<16x128xf32>
    tpu.vector_store %arg9[%c0_6, %c0_7], %7 {strides = array<i32>} : memref<16x128xf32, #tpu.memory_space<vmem>>, vector<16x128xf32>,
    %c0_8 = arith.constant 0 : index
    %c0_9 = arith.constant 0 : index
    %9 = vector.load %arg10[%c0_8, %c0_9] : memref<16x128xf32, #tpu.memory_space<vmem>>, vector<16x128xf32>
    %c0_10 = arith.constant 0 : index
    %c0_11 = arith.constant 0 : index
    %10 = vector.load %arg5[%c0_10, %c0_11] : memref<128x128xbf16, #tpu.memory_space<vmem>>, vector<128x128xbf16>
    %cst_12 = arith.constant dense<0.000000e+00> : vector<16x128xf32>
    %11 = tpu.matmul %3, %10, %cst_12 {dimension_numbers = #tpu.dot_dimension_numbers<[1], [0], [0], [1], [0, 0, 1, 1], [], []>} : vector<16x128xbf16>, vector<128x128xbf16>, vector<16x128xf32> -> vector<16x128xf32>
    %12 = arith.addf %9, %11 : vector<16x128xf32>
    %c0_13 = arith.constant 0 : index
    %c0_14 = arith.constant 0 : index
    %13 = vector.load %arg10[%c0_13, %c0_14] : memref<16x128xf32, #tpu.memory_space<vmem>>, vector<16x128xf32>
    tpu.vector_store %arg10[%c0_13, %c0_14], %12 {strides = array<i32>} : memref<16x128xf32, #tpu.memory_space<vmem>>, vector<16x128xf32>,
    %c0_i32_15 = arith.constant 0 : i32
    %14 = arith.cmpi eq, %arg2, %c0_i32_15 : i32
    %15 = arith.extui %14 : i1 to i32
    %c0_i32_16 = arith.constant 0 : i32
    %16 = arith.cmpi ne, %15, %c0_i32_16 : i32
    scf.if %16 {
      %c0_17 = arith.constant 0 : index
      %c0_18 = arith.constant 0 : index
      %17 = vector.load %arg9[%c0_17, %c0_18] : memref<16x128xf32, #tpu.memory_space<vmem>>, vector<16x128xf32>
      %c0_19 = arith.constant 0 : index
      %c0_20 = arith.constant 0 : index
      %18 = vector.load %arg10[%c0_19, %c0_20] : memref<16x128xf32, #tpu.memory_space<vmem>>, vector<16x128xf32>
      %cst_21 = arith.constant 5.000000e-01 : f32
      %19 = vector.broadcast %cst_21 : f32 to vector<16x128xf32>
      %20 = arith.mulf %19, %18 : vector<16x128xf32>
      %cst_22 = arith.constant 0.707106769 : f32
      %21 = vector.broadcast %cst_22 : f32 to vector<16x128xf32>
      %22 = arith.mulf %18, %21 : vector<16x128xf32>
      %23 = math.erf %22 : vector<16x128xf32>
      %cst_23 = arith.constant 1.000000e+00 : f32
      %24 = vector.broadcast %cst_23 : f32 to vector<16x128xf32>
      %25 = arith.addf %24, %23 : vector<16x128xf32>
      %26 = arith.mulf %20, %25 : vector<16x128xf32>
      %27 = arith.mulf %17, %26 : vector<16x128xf32>
      %c0_24 = arith.constant 0 : index
      %c0_25 = arith.constant 0 : index
      %28 = vector.load %arg8[%c0_24, %c0_25] : memref<16x128xf32, #tpu.memory_space<vmem>>, vector<16x128xf32>
      tpu.vector_store %arg8[%c0_24, %c0_25], %27 {strides = array<i32>} : memref<16x128xf32, #tpu.memory_space<vmem>>, vector<16x128xf32>,
    } else {
    }
    return
  }
  func.func @transform_0(%arg0: i32, %arg1: i32, %arg2: i32) -> (i32, i32) {
    %c0_i32 = arith.constant 0 : i32
    return %arg0, %arg2 : i32, i32
  }
  func.func @transform_1(%arg0: i32, %arg1: i32, %arg2: i32) -> (i32, i32) {
    %c0_i32 = arith.constant 0 : i32
    return %arg2, %arg1 : i32, i32
  }
  func.func @transform_2(%arg0: i32, %arg1: i32, %arg2: i32) -> (i32, i32) {
    %c1_i32 = arith.constant 1 : i32
    %0 = arith.addi %arg1, %c1_i32 : i32
    %c0_i32 = arith.constant 0 : i32
    return %arg2, %0 : i32, i32
  }
  func.func @transform_3(%arg0: i32, %arg1: i32, %arg2: i32) -> (i32, i32) {
    %c0_i32 = arith.constant 0 : i32
    %c0_i32_0 = arith.constant 0 : i32
    return %c0_i32, %arg1 : i32, i32
  }
  func.func @transform_4(%arg0: i32, %arg1: i32, %arg2: i32) -> (i32, i32) {
    %c1_i32 = arith.constant 1 : i32
    %0 = arith.addi %arg1, %c1_i32 : i32
    %c0_i32 = arith.constant 0 : i32
    %c0_i32_0 = arith.constant 0 : i32
    return %c0_i32, %0 : i32, i32
  }
  func.func @transform_5(%arg0: i32, %arg1: i32, %arg2: i32) -> (i32, i32) {
    %c0_i32 = arith.constant 0 : i32
    return %arg0, %arg1 : i32, i32
  }
}

</mosaic_0001>

<bundles_post_ra>
// kernel: tpu_custom_call.1
= control target key start
LH: loop header
LB: loop body
LE: loop exit
PB: predicated region body
PF: predicated region fallthrough
CT: control target
= control target key end

     0   :  { %10 = vsyncpa [#allocation5], 0  ;;  %s636_s0 = inlined_call_operand.hbm [shape: bf16[16,128], index: 0, kind: input, shape index: {}]   ;;  %s637_s1 = inlined_call_operand.hbm [shape: bf16[128,256], index: 1, kind: input, shape index: {}]   ;;  %s638_s2 = inlined_call_operand.hbm [shape: bf16[128,256], index: 2, kind: input, shape index: {}]   ;;  %s639_s3 = inlined_call_operand.vmem [shape: f32[1,256], index: 3, kind: input, shape index: {}]   ;;  %s640_s4 = inlined_call_operand.vmem [shape: f32[1,256], index: 4, kind: input, shape index: {}]   ;;  %s641_s5 = inlined_call_operand.hbm [shape: f32[16,128], index: 5, kind: output, shape index: {}]  }
   0x1   :  { %11 = vsyncpa [#allocation8], 0 }
   0x2   :  { %12 = vsyncpa [#allocation6], 0  ;;  %s574_s18 = smov [#allocation7]   ;;  %s575_s20 = smov [#allocation4]  }
   0x3   :  { %s30_s19 = sshll.u32 %s574_s18, 4  ;;  %s18_s21 = sshll.u32 %s575_s20, 4  ;;  %s31_s19 = int_to_ptr.vmem [resolvable:$true] %s30_s19  ;;  %s19_s21 = int_to_ptr.vmem [resolvable:$true] %s18_s21 }
   0x4   :  { %s493_s22 = scalar_lea.vmem %s31_s19, 1024  ;;  %p498_p1 = scmp.lt.s32.totalorder %s31_s19, %s31_s19 }
   0x5   :  { %p494_p0 = scmp.ne.s32.totalorder %s31_s19, %s493_s22  ;;  %p499_p2 = scmp.lt.s32.totalorder %s493_s22, %s493_s22 }
   0x7   :  { %p500_p3 = por %p499_p2, %p498_p1 }
   0x9   :  { %p501_p4 = pnand %p500_p3, %p494_p0 }
   0xb   :  { %504 = shalt.err (!%p501_p4)
}
   0xc   :  { %s576_s23 = smov 128   ;;  %s577_s24 = smov 64  }
   0xd   :  { %s578_s25 = smov 4   ;;  %s513_s28 = scalar_lea.vmem %s19_s21, 128 }
   0xe   :  { %36 = dma.hbm_to_vmem [thread:$0]  %s637_s1, 1024, %s31_s19, [#allocation8], %s576_s23, %s577_s24, %s578_s25  }
   0xf   :  { %p514_p5 = scmp.ne.s32.totalorder %s19_s21, %s513_s28  ;;  %p518_p6 = scmp.lt.s32.totalorder %s19_s21, %s19_s21 }
  0x10   :  { %p519_p7 = scmp.lt.s32.totalorder %s513_s28, %s513_s28 }
  0x12   :  { %p520_p8 = por %p519_p7, %p518_p6 }
  0x14   :  { %p521_p9 = pnand %p520_p8, %p514_p5 }
  0x16   :  { %524 = shalt.err (!%p521_p9)
}
  0x17   :  { %24 = dma.hbm_to_vmem [thread:$0]  %s636_s0, 128, %s19_s21, [#allocation5], %s577_s24, %s577_s24, %s578_s25  }
  0x18   :  { %s372_s8 = scalar_lea.hbm %s638_s2, 64  ;;  %s579_s9 = smov [#allocation9]  }
  0x19   :  { %s45_s10 = sshll.u32 %s579_s9, 4  ;;  %s46_s10 = int_to_ptr.vmem [resolvable:$true] %s45_s10 }
  0x1a   :  { %s535_s1 = scalar_lea.vmem %s46_s10, 1024  ;;  %p540_p11 = scmp.lt.s32.totalorder %s46_s10, %s46_s10 }
  0x1b   :  { %p536_p10 = scmp.ne.s32.totalorder %s46_s10, %s535_s1  ;;  %p541_p12 = scmp.lt.s32.totalorder %s535_s1, %s535_s1 }
  0x1d   :  { %p542_p13 = por %p541_p12, %p540_p11 }
  0x1f   :  { %p543_p0 = pnand %p542_p13, %p536_p10 }
  0x21   :  { %546 = shalt.err (!%p543_p0)
}
  0x22   :  { %51 = dma.hbm_to_vmem [thread:$0]  %s372_s8, 1024, %s46_s10, [#allocation8], %s576_s23, %s577_s24, %s578_s25  }
  0x23   :  { %568 = dma.done.wait [#allocation5], 128  }
  0x24   :  { %569 = vsyncadd [#allocation5], 4294967168 }
  0x25   :  { %570 = dma.done.wait [#allocation8], 2048  }
  0x26   :  { %571 = vsyncadd [#allocation8], 4294965248  ;;  %v580_v0 = vmov 0.0   ;;  %vm581_vm0 = vmmov 0   ;;  %v464_v1 = vld [vmem:[#allocation9 + $0x38] sm:$0xff]   ;;  %v465_v2 = vld [vmem:[#allocation9 + $0x30] sm:$0xff]  }
  0x27   :  { %434 = vmatprep.subr.bf16.mxu1 %v580_v0  ;;  %414 = vmatprep.subr.bf16.mxu0 %v580_v0  ;;  %v468_v3 = vld [vmem:[#allocation7 + $0x38] sm:$0xff]   ;;  %v466_v4 = vld [vmem:[#allocation9 + $0x28] sm:$0xff]   ;;  %v470_v5 = vld [vmem:[#allocation7 + $0x30] sm:$0xff]  }
  0x28   :  { %450 = vmatprep.mubr.msk.bf16.mxu1 %vm581_vm0, %v580_v0  ;;  %430 = vmatprep.mubr.msk.bf16.mxu0 %vm581_vm0, %v580_v0  ;;  %v467_v6 = vld [vmem:[#allocation9 + $0x20] sm:$0xff]   ;;  %v472_v7 = vld [vmem:[#allocation7 + $0x28] sm:$0xff]   ;;  %v469_v8 = vld [vmem:[#allocation9 + $0x18] sm:$0xff]  }
  0x29   :  { %435 = vmatpush3.bf16.msra.mxu1 %v464_v1  ;;  %415 = vmatpush3.bf16.msra.mxu0 %v468_v3  ;;  %v474_v9 = vld [vmem:[#allocation7 + $0x20] sm:$0xff]   ;;  %v471_v10 = vld [vmem:[#allocation9 + $0x10] sm:$0xff]   ;;  %v476_v11 = vld [vmem:[#allocation7 + $0x18] sm:$0xff]  }
  0x2a   :  { %436 = vmatprep.subr.bf16.mxu1 %v580_v0  ;;  %416 = vmatprep.subr.bf16.mxu0 %v580_v0  ;;  %v473_v12 = vld [vmem:[#allocation9 + $0x8] sm:$0xff]   ;;  %v478_v13 = vld [vmem:[#allocation7 + $0x10] sm:$0xff]   ;;  %v475_v14 = vld [vmem:[#allocation9] sm:$0xff]  }
  0x2b   :  { %v479_v15 = vld [vmem:[#allocation7 + $0x8] sm:$0xff]   ;;  %v477_v16 = vld [vmem:[#allocation4] sm:$0xff]   ;;  %v480_v17 = vld [vmem:[#allocation7] sm:$0xff]  }
  0x2c   :  { %v378_v18 = vld [vmem:[%s640_s4 + $0x1] ss:$0 sm:$0xff]  ;;  %v376_v31 = vld [vmem:[%s639_s3] ss:$0 sm:$0xff]  ;;  %s582_s4 = smov [#allocation10]  }
  0x2d   :  { %437 = vmatpush3.bf16.msra.mxu1 %v465_v2  ;;  %417 = vmatpush3.bf16.msra.mxu0 %v470_v5  ;;  %s359_s13 = sshll.u32 %s582_s4, 4  ;;  %s360_s13 = int_to_ptr.vmem [resolvable:$true] %s359_s13 }
  0x2e   :  { %438 = vmatprep.subr.bf16.mxu1 %v580_v0  ;;  %418 = vmatprep.subr.bf16.mxu0 %v580_v0  ;;  %s548_s14 = scalar_lea.vmem %s360_s13, 256  ;;  %p553_p2 = scmp.lt.s32.totalorder %s360_s13, %s360_s13 }
  0x2f   :  { %p549_p1 = scmp.ne.s32.totalorder %s360_s13, %s548_s14  ;;  %p554_p3 = scmp.lt.s32.totalorder %s548_s14, %s548_s14 }
  0x31   :  { %439 = vmatpush3.bf16.msra.mxu1 %v466_v4  ;;  %419 = vmatpush3.bf16.msra.mxu0 %v472_v7  ;;  %p555_p4 = por %p554_p3, %p553_p2 }
  0x32   :  { %440 = vmatprep.subr.bf16.mxu1 %v580_v0  ;;  %420 = vmatprep.subr.bf16.mxu0 %v580_v0 }
  0x33   :  { %p556_p5 = pnand %p555_p4, %p549_p1 }
  0x35   :  { %441 = vmatpush3.bf16.msra.mxu1 %v467_v6  ;;  %421 = vmatpush3.bf16.msra.mxu0 %v474_v9 }
  0x36   :  { %442 = vmatprep.subr.bf16.mxu1 %v580_v0  ;;  %422 = vmatprep.subr.bf16.mxu0 %v580_v0 }
  0x39   :  { %443 = vmatpush3.bf16.msra.mxu1 %v469_v8  ;;  %423 = vmatpush3.bf16.msra.mxu0 %v476_v11 }
  0x3a   :  { %444 = vmatprep.subr.bf16.mxu1 %v580_v0  ;;  %424 = vmatprep.subr.bf16.mxu0 %v580_v0 }
  0x3d   :  { %445 = vmatpush3.bf16.msra.mxu1 %v471_v10  ;;  %425 = vmatpush3.bf16.msra.mxu0 %v478_v13 }
  0x3e   :  { %446 = vmatprep.subr.bf16.mxu1 %v580_v0  ;;  %426 = vmatprep.subr.bf16.mxu0 %v580_v0 }
  0x41   :  { %447 = vmatpush3.bf16.msra.mxu1 %v473_v12  ;;  %427 = vmatpush3.bf16.msra.mxu0 %v479_v15 }
  0x42   :  { %448 = vmatprep.subr.bf16.mxu1 %v580_v0  ;;  %428 = vmatprep.subr.bf16.mxu0 %v580_v0 }
  0x45   :  { %449 = vmatpush3.bf16.msra.mxu1 %v475_v14  ;;  %429 = vmatpush3.bf16.msra.mxu0 %v480_v17 }
  0x48   :  { %451 = vmatmul.mubr.bf16.vlgmr.msra.gmra.mxu1 %v477_v16  ;;  %431 = vmatmul.mubr.bf16.vlgmr.msra.gmra.mxu0 %v477_v16 }
 0x108   :  { %v322_v19 = vpop.f32.mrf.mxu1  ;;  %v211_v24 = vpop.f32.mrf.mxu0 }
 0x109   :  { %v329_v20 = vadd.f32 %v378_v18, %v322_v19  ;;  %v218_v34 = vadd.f32 %v376_v31, %v211_v24 }
 0x10a   :  { %v452_v21 = vpop.f32.mrf.mxu1  ;;  %v432_v27 = vpop.f32.mrf.mxu0 }
 0x10b   :  { %v342_v22 = vmul.f32 0.70710677, %v329_v20  ;;  %v340_v33 = vmul.f32 0.5, %v329_v20 }
 0x10c   :  { %v325_v23 = vpop.f32.mrf.mxu1  ;;  %v214_v29 = vpop.f32.mrf.mxu0 }
 0x10d   :  { %481 = verf.f32 %v342_v22  ;;  %v330_v25 = vadd.f32 %v378_v18, %v325_v23  ;;  %v219_v41 = vadd.f32 %v376_v31, %v214_v29 }
 0x10e   :  { %v453_v26 = vpop.f32.mrf.mxu1  ;;  %v433_v30 = vpop.f32.mrf.mxu0 }
 0x10f   :  { %v343_v28 = vmul.f32 0.70710677, %v330_v25  ;;  %v341_v38 = vmul.f32 0.5, %v330_v25 }
 0x111   :  { %483 = verf.f32 %v343_v28 }
 0x11a   :  { %v482_v32 = vpop.eup %481 }
 0x11b   :  { %v346_v35 = vadd.f32 1.0, %v482_v32 }
 0x11d   :  { %v348_v36 = vmul.f32 %v346_v35, %v340_v33 }
 0x11e   :  { %v484_v37 = vpop.eup %483 }
 0x11f   :  { %v350_v39 = vmul.f32 %v348_v36, %v218_v34  ;;  %v347_v40 = vadd.f32 1.0, %v484_v37 }
 0x121   :  { %352 = vst [vmem:[#allocation10] sm:$0xff] %v350_v39  ;;  %v349_v42 = vmul.f32 %v347_v40, %v341_v38 }
 0x123   :  { %v351_v43 = vmul.f32 %v349_v42, %v219_v41 }
 0x125   :  { %353 = vst [vmem:[#allocation10 + $0x8] sm:$0xff] %v351_v43 }
 0x126   :  { %559 = shalt.err (!%p556_p5)
}
 0x127   :  { %s583_s3 = smov 8  }
 0x128   :  { %365 = dma.vmem_to_hbm [thread:$0]  %s360_s13, 256, %s641_s5, [#allocation6], %s576_s23, %s576_s23, %s583_s3  }
 0x129   :  { %572 = dma.done.wait [#allocation6], 256  }
 0x12a   :  { %573 = vsyncadd [#allocation6], 4294967040 }
 0x12b   :  { %369 = vsyncpa [#allocation5], 1 }
 0x12c   :  { %370 = vsyncpa [#allocation8], 1 }
 0x12d   :  { %371 = vsyncpa [#allocation6], 1 }

</bundles_post_ra>
